<compile_context>
chip_gen: v6e
topology: v6e:2x2x1
jax: 0.10.0
libtpu: 0.0.40
codegen_flags: <defaults>
</compile_context>

<pallas_src>
import jax
import jax.numpy as jnp
from jax.experimental import pallas as pl
from jax.experimental.pallas import tpu as pltpu


def _round_up(x, n):
    return ((x + n - 1) // n) * n


def _lora_kernel(x_ref, wd_ref, wu_ref, o_ref):
    # x_ref : (tm, in_dim)   block of flattened input rows (native dtype)
    # wd_ref: (in_dim, r)    pre-transposed lora_down weight (VMEM-resident)
    # wu_ref: (r, out_pad)   pre-transposed, pre-scaled lora_up weight
    # o_ref : (tm, out_pad)  lane-dense output tile
    h = jnp.dot(x_ref[...], wd_ref[...],
                preferred_element_type=jnp.float32)            # (tm, r)
    y = jnp.dot(h.astype(wu_ref.dtype), wu_ref[...],
                preferred_element_type=jnp.float32)            # (tm, out_pad)
    o_ref[...] = y.astype(o_ref.dtype)


def lora_forward(x, w_down, w_up, *, multiplier=1.0, alpha=None, tm=512):
    """x: (..., in_dim) -> (..., out_dim), matching LoRAModule.forward (Linear).

    w_down: (lora_dim, in_dim)  PyTorch layout
    w_up  : (out_dim, lora_dim) PyTorch layout
    """
    lora_dim, in_dim = w_down.shape
    out_dim, lora_dim2 = w_up.shape
    assert lora_dim == lora_dim2
    assert x.shape[-1] == in_dim
    if alpha is None or alpha == 0:
        alpha = lora_dim
    scale = float(multiplier) * (float(alpha) / float(lora_dim))

    # One-time HBM ops: transpose both weights, fold the scale into W_up (in f32).
    wd_t = jnp.asarray(w_down).T                                     # (in, r)
    wu_t = (jnp.asarray(w_up).astype(jnp.float32) * scale).astype(
        w_up.dtype).T                                                # (r, out)

    lead = x.shape[:-1]
    x2 = x.reshape(-1, in_dim)
    m = x2.shape[0]

    # Lane-dense output: pad out_dim to a multiple of 128 via zero weight cols.
    out_pad = _round_up(out_dim, 128)
    if out_pad != out_dim:
        wu_t = jnp.pad(wu_t, ((0, 0), (0, out_pad - out_dim)))

    # Row tile: single full block for small m, else tm (multiple of 8); the
    # last block may overhang m (Pallas masks the boundary) -> no x padding.
    tm_eff = m if m <= tm else tm

    x_isz = jnp.dtype(x.dtype).itemsize
    w_isz = jnp.dtype(wu_t.dtype).itemsize

    def footprint(t):
        tiles = 2 * t * (in_dim + out_pad) * x_isz          # double-buffered
        weights = 2 * (in_dim * lora_dim + lora_dim * out_pad) * w_isz
        return tiles + weights

    vmem_budget = 40 * 1024 * 1024
    while footprint(tm_eff) > vmem_budget and tm_eff > 8:
        nxt = max(8, (tm_eff // 2 // 8) * 8)                # halve, 8-aligned
        if nxt == tm_eff:
            break
        tm_eff = nxt

    grid = (pl.cdiv(m, tm_eff),)
    vmem_limit = int(min(max(footprint(tm_eff) + (4 << 20), 32 << 20), 64 << 20))

    flops = 2 * m * lora_dim * (in_dim + out_pad)
    bytes_accessed = (m * (in_dim + out_pad) * x_isz
                      + (in_dim * lora_dim + lora_dim * out_pad) * w_isz)

    out2 = pl.pallas_call(
        _lora_kernel,
        out_shape=jax.ShapeDtypeStruct((m, out_pad), x.dtype),
        grid_spec=pltpu.PrefetchScalarGridSpec(
            num_scalar_prefetch=0,
            grid=grid,
            in_specs=[
                pl.BlockSpec((tm_eff, in_dim), lambda i: (i, 0)),
                pl.BlockSpec((in_dim, lora_dim), lambda i: (0, 0)),
                pl.BlockSpec((lora_dim, out_pad), lambda i: (0, 0)),
            ],
            out_specs=pl.BlockSpec((tm_eff, out_pad), lambda i: (i, 0)),
        ),
        compiler_params=pltpu.CompilerParams(
            dimension_semantics=("parallel",),
            vmem_limit_bytes=vmem_limit),
        cost_estimate=pl.CostEstimate(flops=flops, transcendentals=0,
                                      bytes_accessed=bytes_accessed),
    )(x2, wd_t, wu_t)

    if out_pad != out_dim:
        out2 = out2[:, :out_dim]
    return out2.reshape(*lead, out_dim)


if __name__ == "__main__":
    # Small shapes consistent with a Linear LoRA: batch=2, seq=8, hidden=32.
    batch, seq, in_dim, out_dim, lora_dim = 2, 8, 32, 32, 4
    multiplier, alpha = 1.0, 1.0

    key = jax.random.PRNGKey(0)
    kx, kd, ku = jax.random.split(key, 3)

    x = jax.random.normal(kx, (batch, seq, in_dim), dtype=jnp.float32)

    # kaiming_uniform_(a=sqrt(5)) on a (lora_dim, in_dim) Linear weight
    # -> uniform(-1/sqrt(in_dim), 1/sqrt(in_dim))
    bound = 1.0 / (in_dim ** 0.5)
    w_down = jax.random.uniform(kd, (lora_dim, in_dim), dtype=jnp.float32,
                                minval=-bound, maxval=bound)
    # The real module zero-inits lora_up (output would be all zeros); use
    # deterministic nonzero values here so the kernel compute is exercised.
    w_up = 0.02 * jax.random.normal(ku, (out_dim, lora_dim), dtype=jnp.float32)

    out = lora_forward(x, w_down, w_up, multiplier=multiplier, alpha=alpha)
    out = jax.block_until_ready(out)

    # Pure-JAX reference check of the same semantics (guards the transpose /
    # scale-folding / lane-padding / ragged-grid handling in the wrapper).
    scale = multiplier * (alpha / lora_dim)
    ref = (x.reshape(-1, in_dim) @ w_down.T @ w_up.T * scale).reshape(
        batch, seq, out_dim)
    assert out.shape == (batch, seq, out_dim)
    assert jnp.allclose(out, ref, atol=1e-5, rtol=1e-5)

    print("KERNEL_OK")
</pallas_src>

<mosaic_0001>
module attributes {stable_mosaic.version = 11 : i64} {
  func.func @_lora_kernel(%arg0: i32, %arg1: memref<16x32xf32, #tpu.memory_space<vmem>>, %arg2: memref<32x4xf32, #tpu.memory_space<vmem>>, %arg3: memref<4x128xf32, #tpu.memory_space<vmem>>, %arg4: memref<16x128xf32, #tpu.memory_space<vmem>>) attributes {dimension_semantics = [#tpu.dimension_semantics<parallel>], iteration_bounds = array<i64: 1>, scalar_prefetch = 0 : i64, scratch_operands = 0 : i64, tpu.core_type = #tpu.core_type<tc>, window_params = [{transform_indices = @transform_0, window_bounds = array<i64: 16, 32>}, {pipeline_mode = #tpu.pipeline_mode<synchronous>, transform_indices = @transform_1, window_bounds = array<i64: 32, 4>}, {pipeline_mode = #tpu.pipeline_mode<synchronous>, transform_indices = @transform_2, window_bounds = array<i64: 4, 128>}, {transform_indices = @transform_3, window_bounds = array<i64: 16, 128>}]} {
    %c0 = arith.constant 0 : index
    %c0_0 = arith.constant 0 : index
    %0 = vector.load %arg1[%c0, %c0_0] : memref<16x32xf32, #tpu.memory_space<vmem>>, vector<16x32xf32>
    %c0_1 = arith.constant 0 : index
    %c0_2 = arith.constant 0 : index
    %1 = vector.load %arg2[%c0_1, %c0_2] : memref<32x4xf32, #tpu.memory_space<vmem>>, vector<32x4xf32>
    %cst = arith.constant dense<0.000000e+00> : vector<16x4xf32>
    %2 = tpu.matmul %0, %1, %cst {dimension_numbers = #tpu.dot_dimension_numbers<[1], [0], [0], [1], [0, 0, 1, 1], [], []>} : vector<16x32xf32>, vector<32x4xf32>, vector<16x4xf32> -> vector<16x4xf32>
    %c0_3 = arith.constant 0 : index
    %c0_4 = arith.constant 0 : index
    %3 = vector.load %arg3[%c0_3, %c0_4] : memref<4x128xf32, #tpu.memory_space<vmem>>, vector<4x128xf32>
    %cst_5 = arith.constant dense<0.000000e+00> : vector<16x128xf32>
    %4 = tpu.matmul %2, %3, %cst_5 {dimension_numbers = #tpu.dot_dimension_numbers<[1], [0], [0], [1], [0, 0, 1, 1], [], []>} : vector<16x4xf32>, vector<4x128xf32>, vector<16x128xf32> -> vector<16x128xf32>
    %c0_6 = arith.constant 0 : index
    %c0_7 = arith.constant 0 : index
    %5 = vector.load %arg4[%c0_6, %c0_7] : memref<16x128xf32, #tpu.memory_space<vmem>>, vector<16x128xf32>
    tpu.vector_store %arg4[%c0_6, %c0_7], %4 {strides = array<i32>} : memref<16x128xf32, #tpu.memory_space<vmem>>, vector<16x128xf32>,
    return
  }
  func.func @transform_0(%arg0: i32) -> (i32, i32) {
    %c0_i32 = arith.constant 0 : i32
    %c0_i32_0 = arith.constant 0 : i32
    return %arg0, %c0_i32 : i32, i32
  }
  func.func @transform_1(%arg0: i32) -> (i32, i32) {
    %c0_i32 = arith.constant 0 : i32
    %c0_i32_0 = arith.constant 0 : i32
    %c0_i32_1 = arith.constant 0 : i32
    return %c0_i32, %c0_i32_0 : i32, i32
  }
  func.func @transform_2(%arg0: i32) -> (i32, i32) {
    %c0_i32 = arith.constant 0 : i32
    %c0_i32_0 = arith.constant 0 : i32
    %c0_i32_1 = arith.constant 0 : i32
    return %c0_i32, %c0_i32_0 : i32, i32
  }
  func.func @transform_3(%arg0: i32) -> (i32, i32) {
    %c0_i32 = arith.constant 0 : i32
    %c0_i32_0 = arith.constant 0 : i32
    return %arg0, %c0_i32 : i32, i32
  }
}

</mosaic_0001>

<bundles_post_ra>
// kernel: tpu_custom_call.1
= control target key start
LH: loop header
LB: loop body
LE: loop exit
PB: predicated region body
PF: predicated region fallthrough
CT: control target
= control target key end

     0   :  { %vm21_vm0 = vcmask 261120   ;;  %s310_s0 = inlined_call_operand.vmem [shape: f32[16,32], index: 0, kind: input, shape index: {}]   ;;  %s311_s1 = inlined_call_operand.vmem [shape: f32[32,4], index: 1, kind: input, shape index: {}]   ;;  %s312_s2 = inlined_call_operand.vmem [shape: f32[4,128], index: 2, kind: input, shape index: {}]   ;;  %s313_s3 = inlined_call_operand.hbm [shape: f32[16,128], index: 3, kind: output, shape index: {}]  }
   0x1   :  { %v20_v0 = vld [vmem:[%s311_s1 + $0x18] sm:$0xff]  ;;  %v19_v1 = vld [vmem:[%s311_s1 + $0x10] sm:$0xff]  ;;  %v15_v2 = vld [vmem:[%s310_s0] sm:$0xff] }
   0x2   :  { %222 = vmatprep.subr.mxu0 %v20_v0  ;;  %v18_v3 = vld [vmem:[%s311_s1 + $0x8] sm:$0xff]  ;;  %230 = vmatprep.mubr.msk.f32.mxu0 %vm21_vm0, %v15_v2 }
   0x3   :  { %223 = vmatpush3.msra.mxu0 %v20_v0 }
   0x4   :  { %8 = vsyncpa [#allocation3], 0  ;;  %224 = vmatprep.subr.mxu0 %v19_v1  ;;  %v17_v4 = vld [vmem:[%s311_s1] sm:$0xff]  ;;  %v16_v5 = vld [vmem:[%s310_s0 + $0x8] sm:$0xff]  ;;  %vm111_vm1 = vcmask 1043456   ;;  %vm104_vm2 = vcmask 31744  }
   0x5   :  { %225 = vmatpush3.msra.mxu0 %v19_v1  ;;  %v103_v6 = vld [vmem:[%s312_s2] sm:$0xf]  ;;  %s263_s1 = smov [#allocation2]  }
   0x6   :  { %226 = vmatprep.subr.mxu0 %v18_v3  ;;  %233 = vmatprep.subr.msk.mxu1 %vm111_vm1, %v103_v6  ;;  %s197_s26 = sshll.u32 %s263_s1, 4  ;;  %s198_s26 = int_to_ptr.vmem [resolvable:$true] %s197_s26 }
   0x7   :  { %227 = vmatpush3.msra.mxu0 %v18_v3  ;;  %234 = vmatpush3.msk.msra.mxu1 %vm111_vm1, %v103_v6  ;;  %s241_s0 = scalar_lea.vmem %s198_s26, 256  ;;  %p246_p1 = scmp.lt.s32.totalorder %s198_s26, %s198_s26 }
   0x8   :  { %228 = vmatprep.subr.mxu0 %v17_v4  ;;  %p242_p0 = scmp.ne.s32.totalorder %s198_s26, %s241_s0  ;;  %p247_p2 = scmp.lt.s32.totalorder %s241_s0, %s241_s0 }
   0x9   :  { %229 = vmatpush3.msra.mxu0 %v17_v4 }
   0xa   :  { %231 = vmatmul.mubr.msk.f32.vlgmr.msra.gmra.mxu0 %vm21_vm0, %v16_v5  ;;  %p248_p3 = por %p247_p2, %p246_p1 }
   0xc   :  { %p249_p4 = pnand %p248_p3, %p242_p0 }
  0xca   :  { %v232_v7 = vpop.f32.mrf.mxu0 }
  0xcc   :  { %v94_v8 = vpop.f32.mrf.mxu0 }
  0xcd   :  { %235 = vmatprep.mubr.msk.f32.mxu1 %vm104_vm2, %v94_v8 }
  0xce   :  { %236 = vmatmul.mubr.msk.f32.vlgmr.msra.gmra.mxu1 %vm104_vm2, %v232_v7 }
 0x18e   :  { %v237_v9 = vpop.f32.mrf.mxu1 }
 0x18f   :  { %191 = vst [vmem:[#allocation2 + $0x8] sm:$0xff] %v237_v9 }
 0x190   :  { %v181_v10 = vpop.f32.mrf.mxu1 }
 0x191   :  { %190 = vst [vmem:[#allocation2] sm:$0xff] %v181_v10 }
 0x192   :  { %252 = shalt.err (!%p249_p4)
}
 0x193   :  { %s264_s2 = smov 128   ;;  %s265_s27 = smov 8  }
 0x194   :  { %203 = dma.vmem_to_hbm [thread:$0]  %s198_s26, 256, %s313_s3, [#allocation3], %s264_s2, %s264_s2, %s265_s27  }
 0x195   :  { %261 = dma.done.wait [#allocation3], 256  }
 0x196   :  { %262 = vsyncadd [#allocation3], 4294967040 }
 0x197   :  { %207 = vsyncpa [#allocation3], 1 }

</bundles_post_ra>
